<compile_context>
chip_gen: v6e
topology: v6e:2x2x1
jax: 0.10.0
libtpu: 0.0.40
codegen_flags: <defaults>
</compile_context>

<pallas_src>
import jax
import jax.numpy as jnp
from jax import lax
from jax.experimental import pallas as pl
from jax.experimental.pallas import tpu as pltpu

LANES = 128
SUBLANE_ALIGN = 32            # multiple of the sublane tile for f32/bf16/int8
BLOCK_BYTES_TARGET = 4 << 20  # ~4 MiB per input per grid step
CHUNK_ROWS = 1024             # rows per inner accumulation pass (bounds temps)

_ARBITRARY = getattr(pltpu, "ARBITRARY", "arbitrary")
_CORE_PARALLEL = getattr(pltpu, "CORE_PARALLEL", "parallel")


def _round_up(a, b):
    return (a + b - 1) // b * b


def _num_tensorcores():
    """TensorCores per chip (2 on v7x, 1 on v5e/v6e); conservative fallback 1."""
    try:
        info = pltpu.get_tpu_info()
        for name in ("num_cores", "core_count", "num_tensorcores",
                     "tensorcores_per_chip", "cores_per_chip"):
            v = getattr(info, name, None)
            if isinstance(v, int) and 1 <= v <= 8:
                return v
    except Exception:
        pass
    try:
        kind = jax.devices()[0].device_kind.lower()
        if "v7" in kind:
            return 2
    except Exception:
        pass
    return 1


def _mse_partial_sums(x2d, y2d, rows):
    """Partial sums of (x - y)^2 over a (rows, LANES) slab -> (1, num_splits) f32."""
    itemsize = jnp.dtype(x2d.dtype).itemsize
    max_rows = max(SUBLANE_ALIGN, BLOCK_BYTES_TARGET // (LANES * itemsize))
    block_rows = min(max_rows, _round_up(rows, SUBLANE_ALIGN))
    nblocks = pl.cdiv(rows, block_rows)

    cores = _num_tensorcores()
    num_splits = cores if (cores > 1 and nblocks >= cores) else 1
    bps = pl.cdiv(nblocks, num_splits)                 # blocks per split
    need_mask = (num_splits * bps * block_rows) != rows

    chunk = min(CHUNK_ROWS, block_rows)                # multiple of 32
    n_full = block_rows // chunk                       # >= 1
    rem = block_rows - n_full * chunk                  # multiple of 32 (may be 0)

    def kernel(x_ref, y_ref, o_ref, acc_ref):
        split = pl.program_id(0)
        step = pl.program_id(1)

        @pl.when(step == 0)
        def _():
            acc_ref[...] = jnp.zeros_like(acc_ref)

        block_base = (split * bps + step) * block_rows  # first global row of block

        def accumulate(row_off, nrows):
            xs = x_ref[pl.ds(row_off, nrows), :].astype(jnp.float32)
            ys = y_ref[pl.ds(row_off, nrows), :].astype(jnp.float32)
            d = xs - ys
            sq = d * d

            def unmasked():
                acc_ref[...] += jnp.sum(sq.reshape(-1, 8, LANES), axis=0)

            if need_mask:
                start = block_base + row_off
                overflows = start + nrows > rows

                @pl.when(overflows)
                def _():
                    rid = start + lax.broadcasted_iota(jnp.int32, (nrows, LANES), 0)
                    sqm = jnp.where(rid < rows, sq, 0.0)   # select: pad garbage can't leak
                    acc_ref[...] += jnp.sum(sqm.reshape(-1, 8, LANES), axis=0)

                @pl.when(jnp.logical_not(overflows))
                def _():
                    unmasked()
            else:
                unmasked()

        if n_full > 1:
            @pl.loop(0, n_full)
            def _(c):
                accumulate(pl.multiple_of(c * chunk, chunk), chunk)
        else:
            accumulate(0, chunk)
        if rem:
            accumulate(n_full * chunk, rem)

        @pl.when(step == pl.num_programs(1) - 1)
        def _():
            o_ref[0, 0] = jnp.sum(acc_ref[...])

    def in_map(c, i):
        # Clamp so fully-out-of-range (masked-to-zero) steps never place a DMA
        # window past the end of the array.
        return (jnp.minimum(c * bps + i, nblocks - 1), 0)

    block_bytes = block_rows * LANES * itemsize
    # 2 inputs x 2 pipeline buffers + headroom; at least 32 MiB (safe on all gens,
    # raises v5e's 16 MiB default, matches v6e/v7x defaults).
    vmem_limit = int(max(32 << 20, 4 * block_bytes + (8 << 20)))

    return pl.pallas_call(
        kernel,
        out_shape=jax.ShapeDtypeStruct((1, num_splits), jnp.float32),
        grid_spec=pltpu.PrefetchScalarGridSpec(
            num_scalar_prefetch=0,
            grid=(num_splits, bps),
            in_specs=[
                pl.BlockSpec((block_rows, LANES), in_map),
                pl.BlockSpec((block_rows, LANES), in_map),
            ],
            out_specs=pl.BlockSpec(
                (1, 1), lambda c, i: (0, c),
                memory_space=pltpu.MemorySpace.SMEM),
            scratch_shapes=[pltpu.VMEM((8, LANES), jnp.float32)],
        ),
        compiler_params=pltpu.CompilerParams(
            dimension_semantics=(
                (_CORE_PARALLEL if num_splits > 1 else _ARBITRARY),
                _ARBITRARY,
            ),
            vmem_limit_bytes=vmem_limit,
        ),
        cost_estimate=pl.CostEstimate(
            flops=3 * rows * LANES,
            transcendentals=0,
            bytes_accessed=2 * rows * LANES * itemsize + 4 * num_splits,
        ),
    )(x2d, y2d)


def mse_loss(x, y):
    """Equivalent of torch.nn.functional.mse_loss(x, y) (mean reduction)."""
    assert x.shape == y.shape, "mse_loss requires matching shapes"
    out_dtype = jnp.promote_types(x.dtype, y.dtype)
    x = x.astype(out_dtype)
    y = y.astype(out_dtype)

    n = x.size
    xf = jnp.ravel(x)   # native dtype; f32 cast happens inside the kernel
    yf = jnp.ravel(y)

    bulk = (n // LANES) * LANES
    rows = bulk // LANES

    total = jnp.float32(0.0)
    if rows > 0:
        xb = xf if bulk == n else xf[:bulk]
        yb = yf if bulk == n else yf[:bulk]
        partials = _mse_partial_sums(
            xb.reshape(rows, LANES), yb.reshape(rows, LANES), rows)
        total = total + jnp.sum(partials)
    if bulk != n:
        # Sub-lane-width tail (< 128 elements): negligible, do it in plain jnp.
        td = xf[bulk:].astype(jnp.float32) - yf[bulk:].astype(jnp.float32)
        total = total + jnp.sum(td * td)
    return (total / jnp.float32(n)).astype(out_dtype)


def mse_loss_ref(x, y):
    out_dtype = jnp.promote_types(x.dtype, y.dtype)
    d = x.astype(jnp.float32) - y.astype(jnp.float32)
    return jnp.mean(d * d).astype(out_dtype)


if __name__ == "__main__":
    key = jax.random.PRNGKey(0)
    kx, ky = jax.random.split(key)

    def check(shape, dtype, rtol=1e-5, atol=1e-6):
        x = jax.random.normal(kx, shape, dtype=jnp.float32).astype(dtype)
        y = jax.random.normal(ky, shape, dtype=jnp.float32).astype(dtype)
        got = jax.block_until_ready(mse_loss(x, y))
        ref = jax.block_until_ready(mse_loss_ref(x, y))
        ok = jnp.allclose(got.astype(jnp.float32), ref.astype(jnp.float32),
                          rtol=rtol, atol=atol)
        assert ok, (shape, str(dtype), got, ref)

    # Small NCHW-style prediction/target pair (the module's typical use).
    check((2, 4, 16, 16), jnp.float32)
    # Ragged shape: partial block + sub-128-element tail.
    check((3, 7, 33, 21), jnp.float32)
    # bf16 inputs (cast to f32 inside the kernel).
    check((2, 4, 16, 16), jnp.bfloat16, rtol=2e-2, atol=1e-2)
    # Larger shape: exercises multi-block grid + inner chunk loop + edge masking.
    check((4, 16, 128, 144), jnp.float32)

    print("KERNEL_OK")
</pallas_src>

<mosaic_0001>
module attributes {stable_mosaic.version = 11 : i64} {
  func.func @kernel(%arg0: i32, %arg1: i32, %arg2: memref<32x128xf32, #tpu.memory_space<vmem>>, %arg3: memref<32x128xf32, #tpu.memory_space<vmem>>, %arg4: memref<1x1xf32, #tpu.memory_space<smem>>, %arg5: memref<8x128xf32, #tpu.memory_space<vmem>>) attributes {dimension_semantics = [#tpu.dimension_semantics<arbitrary>, #tpu.dimension_semantics<arbitrary>], iteration_bounds = array<i64: 1, 1>, scalar_prefetch = 0 : i64, scratch_operands = 1 : i64, tpu.core_type = #tpu.core_type<tc>, window_params = [{transform_indices = @transform_0, window_bounds = array<i64: 32, 128>}, {transform_indices = @transform_1, window_bounds = array<i64: 32, 128>}, {transform_indices = @transform_2, window_bounds = array<i64: 1, 1>}]} {
    %c0_i32 = arith.constant 0 : i32
    %0 = arith.cmpi eq, %arg1, %c0_i32 : i32
    %1 = arith.extui %0 : i1 to i32
    %c0_i32_0 = arith.constant 0 : i32
    %2 = arith.cmpi ne, %1, %c0_i32_0 : i32
    scf.if %2 {
      %cst = arith.constant 0.000000e+00 : f32
      %21 = vector.broadcast %cst : f32 to vector<8x128xf32>
      %c0_10 = arith.constant 0 : index
      %c0_11 = arith.constant 0 : index
      %22 = vector.load %arg5[%c0_10, %c0_11] : memref<8x128xf32, #tpu.memory_space<vmem>>, vector<8x128xf32>
      tpu.vector_store %arg5[%c0_10, %c0_11], %21 {strides = array<i32>} : memref<8x128xf32, #tpu.memory_space<vmem>>, vector<8x128xf32>,
    } else {
    }
    %c1_i32 = arith.constant 1 : i32
    %3 = arith.muli %arg0, %c1_i32 : i32
    %4 = arith.addi %3, %arg1 : i32
    %c32_i32 = arith.constant 32 : i32
    %5 = arith.muli %4, %c32_i32 : i32
    %c0 = arith.constant 0 : index
    %c0_1 = arith.constant 0 : index
    %6 = vector.load %arg2[%c0, %c0_1] : memref<32x128xf32, #tpu.memory_space<vmem>>, vector<32x128xf32>
    %c0_2 = arith.constant 0 : index
    %c0_3 = arith.constant 0 : index
    %7 = vector.load %arg3[%c0_2, %c0_3] : memref<32x128xf32, #tpu.memory_space<vmem>>, vector<32x128xf32>
    %8 = arith.subf %6, %7 : vector<32x128xf32>
    %9 = arith.mulf %8, %8 : vector<32x128xf32>
    %c0_i32_4 = arith.constant 0 : i32
    %10 = arith.addi %5, %c0_i32_4 : i32
    %c32_i32_5 = arith.constant 32 : i32
    %11 = arith.addi %10, %c32_i32_5 : i32
    %c16_i32 = arith.constant 16 : i32
    %12 = arith.cmpi sgt, %11, %c16_i32 : i32
    %13 = arith.extui %12 : i1 to i32
    %c0_i32_6 = arith.constant 0 : i32
    %14 = arith.cmpi ne, %13, %c0_i32_6 : i32
    scf.if %14 {
      %21 = tpu.iota {dimensions = array<i32: 0>} : vector<32x128xi32>
      %22 = vector.broadcast %10 : i32 to vector<32x128xi32>
      %23 = arith.addi %22, %21 : vector<32x128xi32>
      %c16_i32_10 = arith.constant 16 : i32
      %24 = vector.broadcast %c16_i32_10 : i32 to vector<32x128xi32>
      %25 = arith.cmpi slt, %23, %24 : vector<32x128xi32>
      %cst = arith.constant 0.000000e+00 : f32
      %26 = vector.broadcast %cst : f32 to vector<32x128xf32>
      %27 = arith.select %25, %9, %26 : vector<32x128xi1>, vector<32x128xf32>
      %c0_11 = arith.constant 0 : index
      %c0_12 = arith.constant 0 : index
      %28 = vector.load %arg5[%c0_11, %c0_12] : memref<8x128xf32, #tpu.memory_space<vmem>>, vector<8x128xf32>
      %29 = vector.shape_cast %27 : vector<32x128xf32> to vector<4x8x128xf32>
      %cst_13 = arith.constant dense<0.000000e+00> : vector<8x128xf32>
      %30 = vector.multi_reduction <add>, %29, %cst_13 [0] : vector<4x8x128xf32> to vector<8x128xf32>
      %31 = arith.addf %28, %30 : vector<8x128xf32>
      %c0_14 = arith.constant 0 : index
      %c0_15 = arith.constant 0 : index
      %32 = vector.load %arg5[%c0_14, %c0_15] : memref<8x128xf32, #tpu.memory_space<vmem>>, vector<8x128xf32>
      tpu.vector_store %arg5[%c0_14, %c0_15], %31 {strides = array<i32>} : memref<8x128xf32, #tpu.memory_space<vmem>>, vector<8x128xf32>,
    } else {
    }
    %true = arith.constant true
    %15 = arith.xori %12, %true : i1
    %16 = arith.extui %15 : i1 to i32
    %c0_i32_7 = arith.constant 0 : i32
    %17 = arith.cmpi ne, %16, %c0_i32_7 : i32
    scf.if %17 {
      %c0_10 = arith.constant 0 : index
      %c0_11 = arith.constant 0 : index
      %21 = vector.load %arg5[%c0_10, %c0_11] : memref<8x128xf32, #tpu.memory_space<vmem>>, vector<8x128xf32>
      %22 = vector.shape_cast %9 : vector<32x128xf32> to vector<4x8x128xf32>
      %cst = arith.constant dense<0.000000e+00> : vector<8x128xf32>
      %23 = vector.multi_reduction <add>, %22, %cst [0] : vector<4x8x128xf32> to vector<8x128xf32>
      %24 = arith.addf %21, %23 : vector<8x128xf32>
      %c0_12 = arith.constant 0 : index
      %c0_13 = arith.constant 0 : index
      %25 = vector.load %arg5[%c0_12, %c0_13] : memref<8x128xf32, #tpu.memory_space<vmem>>, vector<8x128xf32>
      tpu.vector_store %arg5[%c0_12, %c0_13], %24 {strides = array<i32>} : memref<8x128xf32, #tpu.memory_space<vmem>>, vector<8x128xf32>,
    } else {
    }
    %c0_i32_8 = arith.constant 0 : i32
    %18 = arith.cmpi eq, %arg1, %c0_i32_8 : i32
    %19 = arith.extui %18 : i1 to i32
    %c0_i32_9 = arith.constant 0 : i32
    %20 = arith.cmpi ne, %19, %c0_i32_9 : i32
    scf.if %20 {
      %c0_10 = arith.constant 0 : index
      %c0_11 = arith.constant 0 : index
      %21 = vector.load %arg5[%c0_10, %c0_11] : memref<8x128xf32, #tpu.memory_space<vmem>>, vector<8x128xf32>
      %22 = vector.shape_cast %21 : vector<8x128xf32> to vector<1x8x128xf32>
      %cst = arith.constant dense<0.000000e+00> : vector<1xf32>
      %23 = vector.multi_reduction <add>, %22, %cst [1, 2] : vector<1x8x128xf32> to vector<1xf32>
      %24 = vector.shape_cast %23 : vector<1xf32> to vector<1x1x1xf32>
      %25 = vector.extract %24[0, 0, 0] : f32 from vector<1x1x1xf32>
      %c0_12 = arith.constant 0 : index
      %c0_13 = arith.constant 0 : index
      %26 = memref.load %arg4[%c0_12, %c0_13] : memref<1x1xf32, #tpu.memory_space<smem>>
      memref.store %25, %arg4[%c0_12, %c0_13] : memref<1x1xf32, #tpu.memory_space<smem>>
    } else {
    }
    return
  }
  func.func @transform_0(%arg0: i32, %arg1: i32) -> (i32, i32) {
    %c1_i32 = arith.constant 1 : i32
    %0 = arith.muli %arg0, %c1_i32 : i32
    %1 = arith.addi %0, %arg1 : i32
    %c0_i32 = arith.constant 0 : i32
    %2 = arith.minsi %1, %c0_i32 : i32
    %c0_i32_0 = arith.constant 0 : i32
    %c0_i32_1 = arith.constant 0 : i32
    return %2, %c0_i32_0 : i32, i32
  }
  func.func @transform_1(%arg0: i32, %arg1: i32) -> (i32, i32) {
    %c1_i32 = arith.constant 1 : i32
    %0 = arith.muli %arg0, %c1_i32 : i32
    %1 = arith.addi %0, %arg1 : i32
    %c0_i32 = arith.constant 0 : i32
    %2 = arith.minsi %1, %c0_i32 : i32
    %c0_i32_0 = arith.constant 0 : i32
    %c0_i32_1 = arith.constant 0 : i32
    return %2, %c0_i32_0 : i32, i32
  }
  func.func @transform_2(%arg0: i32, %arg1: i32) -> (i32, i32) {
    %c0_i32 = arith.constant 0 : i32
    %c0_i32_0 = arith.constant 0 : i32
    return %c0_i32, %arg0 : i32, i32
  }
}

</mosaic_0001>

<bundles_post_ra>
// kernel: tpu_custom_call.1
= control target key start
LH: loop header
LB: loop body
LE: loop exit
PB: predicated region body
PF: predicated region fallthrough
CT: control target
= control target key end

     0   :  { %7 = vsyncpa [#allocation4], 0  ;;  %s258_s0 = inlined_call_operand.hbm [shape: f32[16,128], index: 0, kind: input, shape index: {}]   ;;  %s259_s1 = inlined_call_operand.hbm [shape: f32[16,128], index: 1, kind: input, shape index: {}]   ;;  %s260_s2 = inlined_call_operand.hbm [shape: f32[1,1], index: 2, kind: output, shape index: {}]  }
   0x1   :  { %8 = vsyncpa [#allocation7], 0 }
   0x2   :  { %9 = vsyncpa [#allocation5], 0 }
   0x3   :  { %20 = vsyncadd [#allocation4], 256  ;;  %s229_s9 = smov [#allocation3]  }
   0x4   :  { %s25_s10 = sshll.u32 %s229_s9, 4  ;;  %s26_s10 = int_to_ptr.vmem [resolvable:$true] %s25_s10 }
   0x5   :  { %s183_s11 = scalar_lea.vmem %s26_s10, 256  ;;  %s187_s12 = scalar_lea.vmem %s26_s10, 512 }
   0x6   :  { %p184_p0 = scmp.ne.s32.totalorder %s26_s10, %s183_s11  ;;  %p188_p1 = scmp.lt.s32.totalorder %s26_s10, %s26_s10 }
   0x7   :  { %p189_p2 = scmp.lt.s32.totalorder %s187_s12, %s183_s11 }
   0x9   :  { %p190_p3 = por %p189_p2, %p188_p1 }
   0xb   :  { %p191_p4 = pnand %p190_p3, %p184_p0 }
   0xd   :  { %194 = shalt.err (!%p191_p4)
}
   0xe   :  { %s230_s13 = smov 128   ;;  %s231_s14 = smov 8  }
   0xf   :  { %31 = dma.hbm_to_vmem [thread:$0]  %s258_s0, 256, %s26_s10, [#allocation4], %s230_s13, %s230_s13, %s231_s14  }
  0x10   :  { %42 = vsyncadd [#allocation7], 256  ;;  %s232_s17 = smov [#allocation6]  }
  0x11   :  { %s47_s18 = sshll.u32 %s232_s17, 4  ;;  %s48_s18 = int_to_ptr.vmem [resolvable:$true] %s47_s18 }
  0x12   :  { %s203_s19 = scalar_lea.vmem %s48_s18, 256  ;;  %s207_s20 = scalar_lea.vmem %s48_s18, 512 }
  0x13   :  { %p204_p5 = scmp.ne.s32.totalorder %s48_s18, %s203_s19  ;;  %p208_p6 = scmp.lt.s32.totalorder %s48_s18, %s48_s18 }
  0x14   :  { %p209_p7 = scmp.lt.s32.totalorder %s207_s20, %s203_s19 }
  0x16   :  { %p210_p8 = por %p209_p7, %p208_p6 }
  0x18   :  { %p211_p9 = pnand %p210_p8, %p204_p5 }
  0x1a   :  { %214 = shalt.err (!%p211_p9)
}
  0x1b   :  { %53 = dma.hbm_to_vmem [thread:$0]  %s259_s1, 256, %s48_s18, [#allocation7], %s230_s13, %s230_s13, %s231_s14  }
  0x1c   :  { %223 = dma.done.wait [#allocation4], 512  }
  0x1d   :  { %224 = vsyncadd [#allocation4], 4294966784 }
  0x1e   :  { %225 = dma.done.wait [#allocation7], 512  }
  0x1f   :  { %226 = vsyncadd [#allocation7], 4294966784  ;;  %v79_v0 = vld [vmem:[#allocation3] sm:$0xff]  ;;  %v80_v1 = vld [vmem:[#allocation3 + $0x8] sm:$0xff]  ;;  %s233_s1 = smov [#allocation8]  }
  0x20   :  { %v83_v2 = vld [vmem:[#allocation6] sm:$0xff]  ;;  %v84_v3 = vld [vmem:[#allocation6 + $0x8] sm:$0xff] }
  0x21   :  { %v87_v4 = vsub.f32 %v79_v0, %v83_v2  ;;  %v88_v5 = vsub.f32 %v80_v1, %v84_v3 }
  0x23   :  { %v91_v6 = vmul.f32 %v87_v4, %v87_v4  ;;  %v92_v7 = vmul.f32 %v88_v5, %v88_v5 }
  0x25   :  { %v119_v8 = vadd.f32 %v92_v7, %v91_v6 }
  0x27   :  { %138 = vadd.xlane.f32.xlu0 %v119_v8 }
  0xb0   :  { %v139_v9 = vpop.xlane.xlu0 %138 }
  0xb1   :  { %v140_v10 = vrot.slane %v139_v9, 4 }
  0xb3   :  { %v141_v11 = vadd.f32 %v140_v10, %v139_v9 }
  0xb5   :  { %v142_v12 = vrot.slane %v141_v11, 2 }
  0xb7   :  { %v143_v13 = vadd.f32 %v142_v12, %v141_v11 }
  0xb9   :  { %v144_v14 = vrot.slane %v143_v13, 1 }
  0xbb   :  { %v145_v15 = vadd.f32 %v144_v14, %v143_v13 }
  0xbd   :  { %168 = vpush %v145_v15 }
  0xee   :  { %s169_s0 = spop %168 }
  0xef   :  { %148 = sst [smem:[#allocation8]] %s169_s0 }
  0xf0   :  { %156 = dma.smem_to_hbm %s233_s1, 16, %s260_s2, [#allocation5]  }
  0xf1   :  { %227 = dma.done.wait [#allocation5], 16  }
  0xf2   :  { %228 = vsyncadd [#allocation5], 4294967280 }
  0xf3   :  { %160 = sfence }
  0xf4   :  { %161 = vsyncpa [#allocation4], 1 }
  0xf5   :  { %162 = vsyncpa [#allocation7], 1 }
  0xf6   :  { %163 = vsyncpa [#allocation5], 1 }

</bundles_post_ra>
